<compile_context>
chip_gen: v7x
topology: tpu7x:2x2x1
jax: 0.10.0
libtpu: 0.0.40
codegen_flags: <defaults>
</compile_context>

<pallas_src>
import functools

import jax
import jax.numpy as jnp
from jax.experimental import pallas as pl
from jax.experimental.pallas import tpu as pltpu


_VMEM_LIMIT = 32 * 1024 * 1024  # explicit scoped-VMEM budget, safe on v5e/v6e/v7x


# ------------------------- embedding gather (P2) ----------------------------


def _embed_gather_kernel(ids_ref, row_ref, o_ref):
    del ids_ref  # only used by the index_maps
    o_ref[...] = row_ref[...]


def embed_lookup(table, input_ids):
    """Gather rows of table (V, D) at input_ids (B, S) -> (B, S, D).

    Data-dependent row index via scalar prefetch; O(B*S*D) bytes of traffic
    instead of a one-hot (B*S, V) @ (V, D) matmul with the table in VMEM.
    """
    B, S = input_ids.shape
    V, D = table.shape
    ids = input_ids.reshape(-1).astype(jnp.int32)
    table3 = table.reshape(V, 1, D)  # keep last two block dims == full dims
    out = pl.pallas_call(
        _embed_gather_kernel,
        out_shape=jax.ShapeDtypeStruct((B * S, 1, D), table.dtype),
        grid_spec=pltpu.PrefetchScalarGridSpec(
            num_scalar_prefetch=1,
            grid=(B * S,),
            in_specs=[pl.BlockSpec((1, 1, D), lambda i, ids_ref: (ids_ref[i], 0, 0))],
            out_specs=pl.BlockSpec((1, 1, D), lambda i, ids_ref: (i, 0, 0)),
        ),
        compiler_params=pltpu.CompilerParams(
            dimension_semantics=("arbitrary",),
            vmem_limit_bytes=_VMEM_LIMIT,
        ),
    )(ids, table3)
    return out.reshape(B, S, D)


# ------------------- fused attention block (norm+QKV+attn+out+res) ----------


def _attn_block_kernel(x_ref, ln_ref, wqkv_ref, wo_ref, bias_ref, mask_ref,
                       o_ref, *, H, Dh):
    HD = H * Dh
    x = x_ref[0]                                         # (S, D) f32 residual stream
    # --- T5LayerNorm (RMS norm, f32 stats) fused in ---
    var = jnp.mean(x * x, axis=-1, keepdims=True)
    n = (x * jax.lax.rsqrt(var + 1e-6) * ln_ref[...]).astype(jnp.bfloat16)
    # --- fused Q|K|V projection: one lane-dense matmul (S, 3*H*Dh) ---
    qkv = jnp.dot(n, wqkv_ref[...], preferred_element_type=jnp.float32)
    mask_b = mask_ref[0]                                 # (1, S) additive -1e9 mask
    ctx_heads = []
    for h in range(H):                                   # static unroll over heads
        q = qkv[:, h * Dh:(h + 1) * Dh].astype(jnp.bfloat16)
        k = qkv[:, HD + h * Dh: HD + (h + 1) * Dh].astype(jnp.bfloat16)
        v = qkv[:, 2 * HD + h * Dh: 2 * HD + (h + 1) * Dh].astype(jnp.bfloat16)
        # T5 does NOT scale scores by 1/sqrt(d_kv).
        scores = jax.lax.dot_general(
            q, k, (((1,), (1,)), ((), ())), preferred_element_type=jnp.float32
        )
        scores = scores + bias_ref[0, h] + mask_b        # (S, S)
        m = jnp.max(scores, axis=-1, keepdims=True)
        e = jnp.exp(scores - m)
        p = e * pl.reciprocal(jnp.sum(e, axis=-1, keepdims=True), approx=True)
        ctx_heads.append(
            jnp.dot(p.astype(jnp.bfloat16), v, preferred_element_type=jnp.float32)
        )
    ctx = jnp.concatenate(ctx_heads, axis=-1)            # (S, H*Dh)
    # --- output projection + residual, fused ---
    o_ref[0] = jnp.dot(ctx.astype(jnp.bfloat16), wo_ref[...],
                       preferred_element_type=jnp.float32) + x


def attention_block(h, ln0, wqkv, wo, pos_bias, mask_bias, H, Dh):
    B, S, D = h.shape
    HD = H * Dh
    return pl.pallas_call(
        functools.partial(_attn_block_kernel, H=H, Dh=Dh),
        out_shape=jax.ShapeDtypeStruct((B, S, D), jnp.float32),
        grid_spec=pltpu.PrefetchScalarGridSpec(
            num_scalar_prefetch=0,
            grid=(B,),
            in_specs=[
                pl.BlockSpec((1, S, D), lambda b: (b, 0, 0)),        # hidden state
                pl.BlockSpec((1, D), lambda b: (0, 0)),              # ln0 weight
                pl.BlockSpec((D, 3 * HD), lambda b: (0, 0)),         # fused Wq|Wk|Wv
                pl.BlockSpec((HD, D), lambda b: (0, 0)),             # Wo
                pl.BlockSpec((1, H, S, S), lambda b: (0, 0, 0, 0)),  # shared pos bias
                pl.BlockSpec((1, 1, S), lambda b: (b, 0, 0)),        # per-batch mask
            ],
            out_specs=pl.BlockSpec((1, S, D), lambda b: (b, 0, 0)),
        ),
        compiler_params=pltpu.CompilerParams(
            dimension_semantics=("parallel",),
            vmem_limit_bytes=_VMEM_LIMIT,
        ),
    )(h, ln0, wqkv, wo, pos_bias, mask_bias)


# -------------------- fused FFN block (norm + wi/ReLU + wo + res) -----------


def _ffn_block_kernel(x_ref, ln_ref, wi_ref, wo_ref, o_ref, n_scr, acc_scr):
    f = pl.program_id(1)

    @pl.when(f == 0)
    def _():
        x = x_ref[0]
        var = jnp.mean(x * x, axis=-1, keepdims=True)
        n_scr[...] = (x * jax.lax.rsqrt(var + 1e-6) * ln_ref[...]).astype(jnp.bfloat16)
        acc_scr[...] = jnp.zeros_like(acc_scr)

    hid = jnp.maximum(
        jnp.dot(n_scr[...], wi_ref[...], preferred_element_type=jnp.float32), 0.0
    )
    acc_scr[...] += jnp.dot(hid.astype(jnp.bfloat16), wo_ref[...],
                            preferred_element_type=jnp.float32)

    @pl.when(f == pl.num_programs(1) - 1)
    def _():
        o_ref[0] = acc_scr[...] + x_ref[0]


def ffn_block(h, ln1, wi, wo_ff, tf=512):
    B, S, D = h.shape
    F = wi.shape[1]
    tf = min(F, tf)
    assert F % tf == 0
    return pl.pallas_call(
        _ffn_block_kernel,
        out_shape=jax.ShapeDtypeStruct((B, S, D), jnp.float32),
        grid_spec=pltpu.PrefetchScalarGridSpec(
            num_scalar_prefetch=0,
            grid=(B, F // tf),                     # F = reduction axis (last, arbitrary)
            in_specs=[
                pl.BlockSpec((1, S, D), lambda b, f: (b, 0, 0)),
                pl.BlockSpec((1, D), lambda b, f: (0, 0)),
                pl.BlockSpec((D, tf), lambda b, f: (0, f)),   # wi (bf16), K-tiled on F
                pl.BlockSpec((tf, D), lambda b, f: (f, 0)),   # wo_ff (bf16)
            ],
            out_specs=pl.BlockSpec((1, S, D), lambda b, f: (b, 0, 0)),
            scratch_shapes=[
                pltpu.VMEM((S, D), jnp.bfloat16),   # normalized activation (reused)
                pltpu.VMEM((S, D), jnp.float32),    # f32 accumulator
            ],
        ),
        compiler_params=pltpu.CompilerParams(
            dimension_semantics=("parallel", "arbitrary"),
            vmem_limit_bytes=_VMEM_LIMIT,
        ),
    )(h, ln1, wi, wo_ff)


# -------------------- fused final RMSNorm + mean pooling --------------------


def _final_norm_pool_kernel(x_ref, ln_ref, o_ref):
    x = x_ref[0]                                          # (S, D)
    var = jnp.mean(x * x, axis=-1, keepdims=True)
    n = x * jax.lax.rsqrt(var + 1e-6) * ln_ref[...]
    # last_hidden_state.mean(dim=1): includes padded positions, as in PyTorch ref.
    o_ref[0] = jnp.mean(n, axis=0, keepdims=True)


def final_norm_mean_pool(h, final_ln):
    B, S, D = h.shape
    out = pl.pallas_call(
        _final_norm_pool_kernel,
        out_shape=jax.ShapeDtypeStruct((B, 1, D), jnp.float32),
        grid_spec=pltpu.PrefetchScalarGridSpec(
            num_scalar_prefetch=0,
            grid=(B,),
            in_specs=[
                pl.BlockSpec((1, S, D), lambda b: (b, 0, 0)),
                pl.BlockSpec((1, D), lambda b: (0, 0)),
            ],
            out_specs=pl.BlockSpec((1, 1, D), lambda b: (b, 0, 0)),
        ),
        compiler_params=pltpu.CompilerParams(
            dimension_semantics=("parallel",),
            vmem_limit_bytes=_VMEM_LIMIT,
        ),
    )(h, final_ln)
    return out.reshape(B, D)


# ------------------------------ T5 glue logic -------------------------------


def _relative_position_bucket(relative_position, num_buckets, max_distance):
    # Bidirectional bucketing (HF T5Attention._relative_position_bucket).
    num_buckets //= 2
    rel_buckets = (relative_position > 0).astype(jnp.int32) * num_buckets
    relative_position = jnp.abs(relative_position)
    max_exact = num_buckets // 2
    is_small = relative_position < max_exact
    rp_f = jnp.maximum(relative_position, 1).astype(jnp.float32)
    rel_if_large = max_exact + (
        jnp.log(rp_f / max_exact)
        / jnp.log(max_distance / max_exact)
        * (num_buckets - max_exact)
    ).astype(jnp.int32)
    rel_if_large = jnp.minimum(rel_if_large, num_buckets - 1)
    rel_buckets = rel_buckets + jnp.where(is_small, relative_position, rel_if_large)
    return rel_buckets


def compute_position_bias(rel_emb, S, num_buckets, max_distance):
    """Batch-independent relative-position bias: (1, H, S, S)."""
    ctx = jnp.arange(S)[:, None]
    mem = jnp.arange(S)[None, :]
    buckets = _relative_position_bucket(mem - ctx, num_buckets, max_distance)  # (S,S)
    values = jnp.take(rel_emb, buckets, axis=0)             # (S, S, H)
    return jnp.transpose(values, (2, 0, 1))[None]           # (1, H, S, S)


def t5_encoder_forward(params, input_ids, attention_mask, H, Dh,
                       num_buckets, max_distance):
    """Equivalent of T5Encoder.forward after tokenization: returns (B, D)."""
    B, S = input_ids.shape
    h = embed_lookup(params["emb"], input_ids)               # (B, S, D) f32
    pos_bias = compute_position_bias(
        params["rel_bias"], S, num_buckets, max_distance
    )                                                        # (1, H, S, S)
    mask_bias = (1.0 - attention_mask.astype(jnp.float32))[:, None, :] * -1e9  # (B,1,S)
    for lp in params["layers"]:
        h = attention_block(h, lp["ln0"], lp["wqkv"], lp["wo"],
                            pos_bias, mask_bias, H, Dh)
        h = ffn_block(h, lp["ln1"], lp["wi"], lp["wo_ff"])
    return final_norm_mean_pool(h, params["final_ln"])       # (B, D)


# --------------------------- deterministic params ---------------------------


def init_params(key, V, D, H, Dh, F, L, num_buckets):
    keys = jax.random.split(key, 2 + L)
    params = {
        "emb": jax.random.normal(keys[0], (V, D), jnp.float32) * 0.05,
        "rel_bias": jax.random.normal(keys[1], (num_buckets, H), jnp.float32) * 0.05,
        "final_ln": jnp.ones((1, D), jnp.float32),
        "layers": [],
    }
    for l in range(L):
        lk = jax.random.split(keys[2 + l], 4)
        params["layers"].append(
            {
                "ln0": jnp.ones((1, D), jnp.float32),
                # fused Q|K|V projection weight, bf16 MXU operand
                "wqkv": (jax.random.normal(lk[0], (D, 3 * H * Dh), jnp.float32)
                         * 0.05).astype(jnp.bfloat16),
                "wo": (jax.random.normal(lk[1], (H * Dh, D), jnp.float32)
                       * 0.05).astype(jnp.bfloat16),
                "ln1": jnp.ones((1, D), jnp.float32),
                "wi": (jax.random.normal(lk[2], (D, F), jnp.float32)
                       * 0.05).astype(jnp.bfloat16),
                "wo_ff": (jax.random.normal(lk[3], (F, D), jnp.float32)
                          * 0.05).astype(jnp.bfloat16),
            }
        )
    return params


# ----------------------------------- main -----------------------------------

if __name__ == "__main__":
    # Small T5-style config (t5-small scaled down): batch=2, seq=16, d_model=64,
    # heads=4, d_kv=16, d_ff=128, layers=2, vocab=256.
    B, S = 2, 16
    V, D, H, Dh, F, L = 256, 64, 4, 16, 128, 2
    NUM_BUCKETS, MAX_DIST = 8, 16

    key = jax.random.PRNGKey(0)
    pkey, ikey = jax.random.split(key)
    params = init_params(pkey, V, D, H, Dh, F, L, NUM_BUCKETS)

    # Pre-tokenized inputs (what the tokenizer would produce, padded to max_length).
    input_ids = jax.random.randint(ikey, (B, S), 1, V, dtype=jnp.int32)
    attention_mask = jnp.concatenate(
        [jnp.ones((B, S - 4), jnp.int32), jnp.zeros((B, 4), jnp.int32)], axis=1
    )
    input_ids = input_ids * attention_mask  # pad token id = 0

    sentence_embeddings = t5_encoder_forward(
        params, input_ids, attention_mask, H, Dh, NUM_BUCKETS, MAX_DIST
    )
    sentence_embeddings = jax.block_until_ready(sentence_embeddings)

    assert sentence_embeddings.shape == (B, D)
    assert sentence_embeddings.dtype == jnp.float32
    assert bool(jnp.all(jnp.isfinite(sentence_embeddings)))
    print("KERNEL_OK")
</pallas_src>

<mosaic_0001>
module attributes {stable_mosaic.version = 11 : i64} {
  func.func @_embed_gather_kernel(%arg0: i32, %arg1: memref<32xi32, #tpu.memory_space<smem>>, %arg2: memref<1x1x64xf32, #tpu.memory_space<vmem>>, %arg3: memref<1x1x64xf32, #tpu.memory_space<vmem>>) attributes {dimension_semantics = [#tpu.dimension_semantics<arbitrary>], iteration_bounds = array<i64: 32>, scalar_prefetch = 1 : i64, scratch_operands = 0 : i64, tpu.core_type = #tpu.core_type<tc>, window_params = [{transform_indices = @transform_0, window_bounds = array<i64: 1, 1, 64>}, {transform_indices = @transform_1, window_bounds = array<i64: 1, 1, 64>}]} {
    %c0 = arith.constant 0 : index
    %c0_0 = arith.constant 0 : index
    %c0_1 = arith.constant 0 : index
    %0 = vector.load %arg2[%c0, %c0_0, %c0_1] : memref<1x1x64xf32, #tpu.memory_space<vmem>>, vector<1x1x64xf32>
    %c0_2 = arith.constant 0 : index
    %c0_3 = arith.constant 0 : index
    %c0_4 = arith.constant 0 : index
    %1 = vector.load %arg3[%c0_2, %c0_3, %c0_4] : memref<1x1x64xf32, #tpu.memory_space<vmem>>, vector<1x1x64xf32>
    tpu.vector_store %arg3[%c0_2, %c0_3, %c0_4], %0 {strides = array<i32>} : memref<1x1x64xf32, #tpu.memory_space<vmem>>, vector<1x1x64xf32>,
    return
  }
  func.func @transform_0(%arg0: i32, %arg1: memref<32xi32, #tpu.memory_space<smem>>) -> (i32, i32, i32) {
    %0 = arith.index_cast %arg0 : i32 to index
    %1 = memref.load %arg1[%0] : memref<32xi32, #tpu.memory_space<smem>>
    %c0_i32 = arith.constant 0 : i32
    %c0_i32_0 = arith.constant 0 : i32
    %c0_i32_1 = arith.constant 0 : i32
    return %1, %c0_i32, %c0_i32_0 : i32, i32, i32
  }
  func.func @transform_1(%arg0: i32, %arg1: memref<32xi32, #tpu.memory_space<smem>>) -> (i32, i32, i32) {
    %c0_i32 = arith.constant 0 : i32
    %c0_i32_0 = arith.constant 0 : i32
    %c0_i32_1 = arith.constant 0 : i32
    return %arg0, %c0_i32, %c0_i32_0 : i32, i32, i32
  }
}

</mosaic_0001>

<bundles_post_ra>
// kernel: tpu_custom_call.1
= control target key start
LH: loop header
LB: loop body
LE: loop exit
PB: predicated region body
PF: predicated region fallthrough
CT: control target
= control target key end

     0   :  { %s429_s0 = inlined_call_operand.vmem [shape: s32[32], index: 0, kind: input, shape index: {}]   ;;  %s430_s1 = inlined_call_operand.vmem [shape: f32[256,1,64], index: 1, kind: input, shape index: {}]   ;;  %s431_s2 = inlined_call_operand.hbm [shape: f32[32,1,64], index: 2, kind: output, shape index: {}]  }
   0x1   :  { %s7_s11 = sshll.u32 %s429_s0, 4  ;;  %s8_s11 = int_to_ptr.vmem [resolvable:$true] %s7_s11 }
   0x2   :  { %s237_s12 = scalar_lea.vmem %s8_s11, 16  ;;  %p242_p1 = scmp.lt.s32.totalorder %s8_s11, %s8_s11 }
   0x3   :  { %p238_p0 = scmp.ne.s32.totalorder %s8_s11, %s237_s12  ;;  %p243_p2 = scmp.lt.s32.totalorder %s237_s12, %s237_s12 }
   0x5   :  { %p244_p3 = por %p243_p2, %p242_p1 }
   0x7   :  { %p245_p4 = pnand %p244_p3, %p238_p0 }
   0x9   :  { %248 = shalt.err (!%p245_p4)  }
   0xa   :  { %s315_s13 = smov [#allocation3]  }
   0xb   :  { %10 = dma.vmem_to_smem %s8_s11, 16, %s315_s13, [#allocation2] }
   0xc   :  { %293 = dma.done.wait [#allocation2], 16 }
   0xd   :  { %294 = vsyncadd [#allocation2], 4294967280 }
   0xe   :  { %12 = sfence }
   0xf   :  { %13 = vsyncpa [#allocation5], 0 }
  0x10   :  { %15 = vsyncpa [#allocation5 + $0x1], 0  ;;  %s335_s14 = smov 0   ;;  %s337_s15 = smov 0  }
  0x11   :  { %s339_s0 = smov 0   ;;  %s341_s16 = smov 0  }
  0x12 LB: > { %s189_s17 = sadd.s32 4294967295, %s313_s16   ;;  %s190_s18 = sadd.s32 4294967294, %s313_s16   ;;  %s313_s16 = sphi %s341_s16, %s437_s16   ;;  %s309_s0 = sphi %s339_s0, %s436_s0   ;;  %s305_s15 = sphi %s337_s15, %s435_s15   ;;  %s301_s14 = sphi %s335_s14, %s434_s14  }
  0x13   : > { %s358_s19 = sadd.s32 1, %s313_s16   ;;  %s56_s20 = sadd.s32 1, %s309_s0 }
  0x14   : > { %s53_s21 = ssub.s32 %s313_s16, %s358_s19  ;;  %p66_p5 = scmp.ne.s32.totalorder %s309_s0, %s305_s15 }
  0x15   : > { %p54_p6 = scmp.eq.s32.totalorder %s53_s21, 0  ;;  %p67_p7 = scmp.eq.s32.totalorder %s189_s17, 31 }
  0x16   : > { %p72_p8 = scmp.ne.s32.totalorder %s305_s15, %s301_s14  ;;  %p73_p9 = scmp.eq.s32.totalorder %s190_s18, 31 }
  0x17   : > { %s368_s22 = scalar_select %p54_p6, %s309_s0, %s56_s20  }
  0x18   : > { %p370_p10 = por %p67_p7, %p66_p5  ;;  %p374_p11 = por %p73_p9, %p72_p8 }
  0x19   : > { %p193_p12 = scmp.ge.s32.totalorder %s313_s16, 1  ;;  %p99_p13 = scmp.lt.s32.totalorder %s313_s16, 33 }
  0x1b   : > { %p100_p0 = pnand %p193_p12, %p99_p13 }
  0x1c   : > { %s115_s25 = sand.u32 (!%p100_p0), 1, %s305_s15   ;;  %s117_s26 = sld [smem:[#allocation3 + %s189_s17]] (!%p100_p0)  ;;  %vm123_vm0 = vcmask (!%p100_p0), 516096  }
  0x1d   : > { %103 = sbr.rel (%p100_p0) target bundleno = 55 (0x37), region = 24  ;;  %s116_s27 = scalar_lea.vmem (!%p100_p0), [#allocation4], %s115_s25 }
  0x1e   : > { %s138_s28 = sshll.u32 (!%p100_p0), %s116_s27, 4  ;;  %s194_s29 = sshll.u32 (!%p100_p0), %s189_s17, 4  ;;  %s381_s28 = int_to_ptr.vmem [resolvable:$true] %s138_s28 }
  0x1f   : > { %s389_s7 = scalar_lea.hbm (!%p100_p0), %s431_s2, %s194_s29  ;;  %s126_s8 = scalar_lea.sflag (!%p100_p0), [#allocation5], %s115_s25 }
  0x20   : > { %s249_s9 = scalar_lea.vmem (!%p100_p0), %s381_s28, 16  ;;  %s316_s10 = smov (!%p100_p0), [#allocation4]  }
  0x21   : > { %p250_p2 = scmp.ne.s32.totalorder (!%p100_p0), %s381_s28, %s249_s9  ;;  %s253_s11 = sshll.u32 (!%p100_p0), %s316_s10, 4  ;;  %s254_s11 = int_to_ptr.vmem [resolvable:$false] %s253_s11 }
  0x22   : > { %p118_p1 = scmp.lt.s32.totalorder (!%p100_p0), %s117_s26, 255  ;;  %s255_s12 = scalar_lea.vmem (!%p100_p0), %s254_s11, 32 }
  0x23   : > { %p251_p3 = pnand (!%p100_p0), %p250_p2, %p370_p10  ;;  %p256_p5 = scmp.lt.s32.totalorder (!%p100_p0), %s381_s28, %s254_s11 }
  0x24   : > { %s439_s26 = smov (!%p118_p1, %s117_s26), 255  ;;  %p257_p6 = scmp.lt.s32.totalorder %s255_s12, %s249_s9 }
  0x25   : > { %s120_s4 = scalar_lea.vmem %s430_s1, %s439_s26  ;;  %p252_p4 = pneg %p251_p3 }
  0x26   : > { %v122_v0 = vld [vmem:[%s120_s4] sm:$0x1]  ;;  %p258_p7 = por %p257_p6, %p256_p5 }
  0x27   : > { %124 = vst.msk [vmem:[%s116_s27] sm:$0x1] %vm123_vm0, %v122_v0 }
  0x28   : > { %p259_p8 = pnand %p258_p7, %p252_p4 }
  0x2a   : > { %262 = shalt.err (!%p259_p8)
}
  0x2b   : > { %s263_s13 = scalar_lea.hbm %s389_s7, 16  ;;  %s267_s20 = scalar_lea.hbm %s431_s2, 512 }
  0x2c   : > { %p264_p9 = scmp.ne.s32.totalorder %s389_s7, %s263_s13  ;;  %p268_p0 = scmp.lt.u32.totalorder %s389_s7, %s431_s2 }
  0x2d   : > { %p269_p1 = scmp.lt.u32.totalorder %s267_s20, %s263_s13  ;;  %p271_p3 = scmp.lt.u32.totalorder %s263_s13, %s389_s7 }
  0x2e   : > { %p265_p12 = pnand %p264_p9, %p370_p10 }
  0x2f   : > { %p270_p2 = por %p269_p1, %p268_p0 }
  0x30   : > { %p266_p13 = pneg %p265_p12 }
  0x31   : > { %p272_p4 = por %p271_p3, %p270_p2 }
  0x33   : > { %p273_p5 = pnand %p272_p4, %p266_p13 }
  0x35   : > { %276 = shalt.err (!%p273_p5)
}
  0x36   : > { %197 = dma.vmem_to_hbm [thread:$0]  (%p370_p10), %s381_s28, 16, %s389_s7, %s126_s8  }
  0x37 PF: > { %p203_p6 = scmp.ge.s32.totalorder %s313_s16, 2  ;;  %s150_s26 = sand.u32 1, %s301_s14  }
  0x38   : > { %s151_s27 = scalar_lea.sflag [#allocation5], %s150_s26 }
  0x39   : > { %p200_p7 = pnand %p203_p6, %p374_p11 }
  0x3b   : > { %296 = dma.done.wait (!%p200_p7), %s151_s27, 16  }
  0x3c   : > { %298 = vsyncadd (!%p200_p7), %s151_s27, 4294967280  ;;  %p18_p8 = scmp.ge.s32.totalorder %s358_s19, 34   ;;  %s434_s14 = smov %s305_s15 }
  0x3d   : > { %s435_s15 = smov %s309_s0  ;;  %s436_s0 = smov %s368_s22 }
  0x3e   : > { %s437_s16 = smov %s358_s19  ;;  %20 = sbr.rel (!%p18_p8) target bundleno = 18 (0x12), region = 59 }
  0x45   :  { %155 = vsyncpa [#allocation5], 1 }
  0x46   :  { %157 = vsyncpa [#allocation5 + $0x1], 1 }

</bundles_post_ra>
